<compile_context>
chip_gen: v7x
topology: tpu7x:2x2x1
jax: 0.10.0
libtpu: 0.0.40
codegen_flags: <defaults>
</compile_context>

<pallas_src>
import functools

import jax
import jax.numpy as jnp
from jax import lax
from jax.experimental import pallas as pl
from jax.experimental.pallas import tpu as pltpu


def residual_kernel(mask_ref, x_ref, w1_ref, w2_ref, o_ref, xpad_ref, buf_ref,
                    *, H, W, NB, pad, use_im2col):
    # mask_ref : (4, NB*HW) {0,1} masks: row!=0, row!=H-1, col!=0, col!=W-1
    # x_ref    : (NB, Cin, HW)   NB batch images, spatial dim in lanes
    # w1_ref   : (Cout, 9*Cin)   3x3 conv weights, column = (ky*3+kx)*Cin + ci
    # w2_ref   : (Cout, Cout)    1x1 conv weights
    # o_ref    : (NB, Cout, HW)
    # xpad_ref : (Cin, NB*HW + 2*pad) VMEM scratch: flat folded image + halo
    # buf_ref  : (9*Cin, NB*HW) im2col scratch  OR  (Cout, NB*HW) f32 accumulator
    Cin = x_ref.shape[1]
    HW = H * W
    L = NB * HW
    hal = W + 1                      # halo columns the +/-1 row shifts can read
    cdt = xpad_ref.dtype

    # Zero only the touched halo columns (2*(W+1)*Cin elements ~= 1 vreg/side).
    # Every value read from the halo is also multiplied by a 0 mask below, so
    # this is purely NaN-proofing of uninitialised VMEM - cheap and core-safe.
    xpad_ref[:, pad - hal:pad] = jnp.zeros((Cin, hal), cdt)
    xpad_ref[:, pad + L:pad + L + hal] = jnp.zeros((Cin, hal), cdt)

    # Stage the NB images side by side in the lane axis (lane-aligned stores:
    # pad is a multiple of 128 and, whenever NB > 1, HW is too).
    for b in range(NB):
        xpad_ref[:, pad + b * HW:pad + (b + 1) * HW] = x_ref[b].astype(cdt)

    m_top, m_bot = mask_ref[0:1, :], mask_ref[1:2, :]
    m_lft, m_rgt = mask_ref[2:3, :], mask_ref[3:4, :]
    row_m = (m_top, None, m_bot)
    col_m = (m_lft, None, m_rgt)

    def tap_view(ky, kx):
        # Lane-shifted view of the folded image; one VPU multiply applies the
        # boundary mask (row mask also blocks cross-image row leakage).
        off = (ky - 1) * W + (kx - 1)
        t = xpad_ref[:, pad + off:pad + off + L]          # (Cin, L)
        m = row_m[ky]
        if col_m[kx] is not None:
            m = col_m[kx] if m is None else m * col_m[kx]
        return t if m is None else t * m

    if use_im2col:
        # Small Cin: materialise (9*Cin, L) im2col and do ONE fused MXU matmul
        # (larger K fills the MXU better than 9 skinny matmuls).
        for ky in range(3):
            for kx in range(3):
                tap = ky * 3 + kx
                buf_ref[tap * Cin:(tap + 1) * Cin, :] = tap_view(ky, kx)
        h = jnp.dot(w1_ref[...], buf_ref[...],
                    preferred_element_type=jnp.float32)
    else:
        # Moderate/large Cin: skip the 9x-expanded im2col buffer entirely and
        # accumulate 9 per-tap matmuls into an f32 VMEM accumulator.
        for ky in range(3):
            for kx in range(3):
                tap = ky * 3 + kx
                d = jnp.dot(w1_ref[:, tap * Cin:(tap + 1) * Cin],
                            tap_view(ky, kx),
                            preferred_element_type=jnp.float32)
                if tap == 0:
                    buf_ref[...] = d
                else:
                    buf_ref[...] += d
        h = buf_ref[...]

    # ReLU -> 1x1 conv (channel mix) -> residual add in f32 -> output cast.
    h = jnp.maximum(h, 0.0).astype(w2_ref.dtype)
    y = jnp.dot(w2_ref[...], h, preferred_element_type=jnp.float32)
    for b in range(NB):
        o_ref[b] = (x_ref[b].astype(jnp.float32)
                    + y[:, b * HW:(b + 1) * HW]).astype(o_ref.dtype)


def _round_up(a, b):
    return -(-a // b) * b


def _vmem_need_bytes(nb, *, HW, pad, Cin, Cout, in_isz, c_isz, use_im2col):
    """Rough per-step VMEM footprint: scratches + double-buffered I/O blocks."""
    L = nb * HW
    scratch = Cin * (L + 2 * pad) * c_isz                        # padded image
    scratch += 9 * Cin * L * c_isz if use_im2col else Cout * L * 4
    blocks = 2 * nb * Cin * HW * in_isz                          # x  (2 bufs)
    blocks += 2 * nb * Cout * HW * in_isz                        # out (2 bufs)
    blocks += 2 * 4 * L * c_isz                                  # masks
    blocks += 2 * (9 * Cin + Cout) * Cout * c_isz                # w1 + w2
    return scratch + blocks


def residual_forward(x_nchw, w1_oihw, w2_oihw, *, compute_dtype=jnp.bfloat16):
    """x: (N, Cin, H, W); w1: (Cout, Cin, 3, 3); w2: (Cout, Cout, 1, 1)."""
    N, Cin, H, W = x_nchw.shape
    Cout = w1_oihw.shape[0]
    assert Cin == Cout, "residual add requires in_channels == out_channels"
    HW = H * W

    in_isz = jnp.dtype(x_nchw.dtype).itemsize
    c_isz = jnp.dtype(compute_dtype).itemsize
    use_im2col = 9 * Cin <= 128          # fused im2col only while K stays small
    pad = _round_up(W + 1, 128)          # lane-aligned interior offset (>= W+1)

    need = functools.partial(_vmem_need_bytes, HW=HW, pad=pad, Cin=Cin,
                             Cout=Cout, in_isz=in_isz, c_isz=c_isz,
                             use_im2col=use_im2col)

    # Fold several batch images into the lane axis of one grid step: amortizes
    # per-step overhead and widens the matmul lane dimension.  Requires
    # HW % 128 == 0 so every image-segment store stays lane-aligned.
    nb = 1
    if HW % 128 == 0:
        for cand in range(1, N + 1):
            if N % cand:
                continue
            if cand * HW > 4096 or need(cand) > 24 * 2 ** 20:
                break
            nb = cand
    L = nb * HW

    # NCHW -> (N, C, H*W): pure reshape of contiguous memory (no HBM copy).
    x_flat = x_nchw.reshape(N, Cin, HW)
    # (Cout, Cin, 3, 3) -> (Cout, 9*Cin), column index = (ky*3 + kx)*Cin + ci.
    w1_mat = jnp.transpose(w1_oihw, (0, 2, 3, 1)).reshape(Cout, 9 * Cin)
    w1_mat = w1_mat.astype(compute_dtype)
    w2_mat = w2_oihw[:, :, 0, 0].astype(compute_dtype)

    # {0,1} boundary masks (row-top / row-bottom / col-left / col-right),
    # tiled across the nb folded images.
    q = jnp.arange(HW, dtype=jnp.int32)
    r, c = q // W, q % W
    masks = jnp.stack([r != 0, r != H - 1, c != 0, c != W - 1])
    masks = jnp.tile(masks.astype(compute_dtype), (1, nb))            # (4, L)

    kernel = functools.partial(residual_kernel, H=H, W=W, NB=nb, pad=pad,
                               use_im2col=use_im2col)

    # Raise scoped VMEM to the computed footprint (+50% headroom); capped at
    # 64 MiB so the same setting is valid on v7x's physical VMEM.
    vmem_limit = int(min(64 * 2 ** 20, max(32 * 2 ** 20, 1.5 * need(nb))))

    buf_scratch = (pltpu.VMEM((9 * Cin, L), compute_dtype) if use_im2col
                   else pltpu.VMEM((Cout, L), jnp.float32))

    # TODO(synk): for very large H*W, add a row-tiled "parallel" grid axis with
    # a +/-1-row halo so the per-step footprint fits v7x's 64 MiB VMEM and both
    # TensorCores stay busy when N is small.
    out_flat = pl.pallas_call(
        kernel,
        out_shape=jax.ShapeDtypeStruct((N, Cout, HW), x_nchw.dtype),
        grid_spec=pltpu.PrefetchScalarGridSpec(
            num_scalar_prefetch=0,
            grid=(N // nb,),
            in_specs=[
                pl.BlockSpec((4, L), lambda n: (0, 0)),              # masks
                pl.BlockSpec((nb, Cin, HW), lambda n: (n, 0, 0)),    # x
                pl.BlockSpec((Cout, 9 * Cin), lambda n: (0, 0)),     # w1
                pl.BlockSpec((Cout, Cout), lambda n: (0, 0)),        # w2
            ],
            out_specs=pl.BlockSpec((nb, Cout, HW), lambda n: (n, 0, 0)),
            scratch_shapes=[
                pltpu.VMEM((Cin, L + 2 * pad), compute_dtype),       # padded img
                buf_scratch,                                         # im2col/acc
            ],
        ),
        compiler_params=pltpu.CompilerParams(
            dimension_semantics=("parallel",),
            vmem_limit_bytes=vmem_limit,
        ),
    )(masks, x_flat, w1_mat, w2_mat)

    return out_flat.reshape(N, Cout, H, W)


def _reference(x_nchw, w1_oihw, w2_oihw):
    """Pure-JAX reference matching PyTorch semantics (NCHW convs)."""
    dn = lax.conv_dimension_numbers(x_nchw.shape, w1_oihw.shape,
                                    ("NCHW", "OIHW", "NCHW"))
    h = lax.conv_general_dilated(x_nchw, w1_oihw, (1, 1), ((1, 1), (1, 1)),
                                 dimension_numbers=dn)
    h = jnp.maximum(h, 0.0)
    y = lax.conv_general_dilated(h, w2_oihw, (1, 1), ((0, 0), (0, 0)),
                                 dimension_numbers=dn)
    return x_nchw + y


if __name__ == "__main__":
    key = jax.random.PRNGKey(0)
    k_x, k_w1, k_w2 = jax.random.split(key, 3)

    N, C, H, W = 2, 4, 16, 16  # in_channels == out_channels == 4
    x = jax.random.normal(k_x, (N, C, H, W), dtype=jnp.float32)

    # Deterministic weight init (kaiming-uniform-ish scale), PyTorch OIHW shapes.
    fan_in1 = C * 3 * 3
    w1 = jax.random.uniform(k_w1, (C, C, 3, 3), dtype=jnp.float32,
                            minval=-1.0, maxval=1.0) / jnp.sqrt(fan_in1)
    fan_in2 = C * 1 * 1
    w2 = jax.random.uniform(k_w2, (C, C, 1, 1), dtype=jnp.float32,
                            minval=-1.0, maxval=1.0) / jnp.sqrt(fan_in2)

    ref = _reference(x, w1, w2)

    # Exact-path validation: f32 staging / f32 matmuls.
    out_f32 = residual_forward(x, w1, w2, compute_dtype=jnp.float32)
    jax.block_until_ready(out_f32)
    assert out_f32.shape == ref.shape == (N, C, H, W)
    assert jnp.allclose(out_f32, ref, atol=1e-4, rtol=1e-4), "f32 path mismatch"

    # Fast path: bf16 MXU staging, f32 accumulation + residual add.
    out = residual_forward(x, w1, w2)
    jax.block_until_ready(out)
    assert out.shape == ref.shape
    assert jnp.allclose(out, ref, atol=3e-2, rtol=3e-2), "bf16 path mismatch"

    print("KERNEL_OK")
</pallas_src>

<mosaic_0001>
module attributes {stable_mosaic.version = 11 : i64} {
  func.func @residual_kernel(%arg0: i32, %arg1: memref<4x512xf32, #tpu.memory_space<vmem>>, %arg2: memref<2x4x256xf32, #tpu.memory_space<vmem>>, %arg3: memref<4x36xf32, #tpu.memory_space<vmem>>, %arg4: memref<4x4xf32, #tpu.memory_space<vmem>>, %arg5: memref<2x4x256xf32, #tpu.memory_space<vmem>>, %arg6: memref<4x768xf32, #tpu.memory_space<vmem>>, %arg7: memref<36x512xf32, #tpu.memory_space<vmem>>) attributes {dimension_semantics = [#tpu.dimension_semantics<parallel>], iteration_bounds = array<i64: 1>, scalar_prefetch = 0 : i64, scratch_operands = 2 : i64, tpu.core_type = #tpu.core_type<tc>, window_params = [{pipeline_mode = #tpu.pipeline_mode<synchronous>, transform_indices = @transform_0, window_bounds = array<i64: 4, 512>}, {transform_indices = @transform_1, window_bounds = array<i64: 2, 4, 256>}, {pipeline_mode = #tpu.pipeline_mode<synchronous>, transform_indices = @transform_2, window_bounds = array<i64: 4, 36>}, {pipeline_mode = #tpu.pipeline_mode<synchronous>, transform_indices = @transform_3, window_bounds = array<i64: 4, 4>}, {transform_indices = @transform_4, window_bounds = array<i64: 2, 4, 256>}]} {
    %cst = arith.constant 0.000000e+00 : f32
    %0 = vector.broadcast %cst : f32 to vector<4x17xf32>
    %c0 = arith.constant 0 : index
    %c111 = arith.constant 111 : index
    %1 = vector.load %arg6[%c0, %c111] : memref<4x768xf32, #tpu.memory_space<vmem>>, vector<4x17xf32>
    tpu.vector_store %arg6[%c0, %c111], %0 {strides = array<i32>} : memref<4x768xf32, #tpu.memory_space<vmem>>, vector<4x17xf32>,
    %cst_0 = arith.constant 0.000000e+00 : f32
    %2 = vector.broadcast %cst_0 : f32 to vector<4x17xf32>
    %c0_1 = arith.constant 0 : index
    %c640 = arith.constant 640 : index
    %3 = vector.load %arg6[%c0_1, %c640] : memref<4x768xf32, #tpu.memory_space<vmem>>, vector<4x17xf32>
    tpu.vector_store %arg6[%c0_1, %c640], %2 {strides = array<i32>} : memref<4x768xf32, #tpu.memory_space<vmem>>, vector<4x17xf32>,
    %c0_2 = arith.constant 0 : index
    %c0_3 = arith.constant 0 : index
    %c0_4 = arith.constant 0 : index
    %4 = vector.load %arg2[%c0_2, %c0_3, %c0_4] : memref<2x4x256xf32, #tpu.memory_space<vmem>>, vector<1x4x256xf32>
    %5 = vector.shape_cast %4 : vector<1x4x256xf32> to vector<4x256xf32>
    %c0_5 = arith.constant 0 : index
    %c128 = arith.constant 128 : index
    %6 = vector.load %arg6[%c0_5, %c128] : memref<4x768xf32, #tpu.memory_space<vmem>>, vector<4x256xf32>
    tpu.vector_store %arg6[%c0_5, %c128], %5 {strides = array<i32>} : memref<4x768xf32, #tpu.memory_space<vmem>>, vector<4x256xf32>,
    %c1 = arith.constant 1 : index
    %c0_6 = arith.constant 0 : index
    %c0_7 = arith.constant 0 : index
    %7 = vector.load %arg2[%c1, %c0_6, %c0_7] : memref<2x4x256xf32, #tpu.memory_space<vmem>>, vector<1x4x256xf32>
    %8 = vector.shape_cast %7 : vector<1x4x256xf32> to vector<4x256xf32>
    %c0_8 = arith.constant 0 : index
    %c384 = arith.constant 384 : index
    %9 = vector.load %arg6[%c0_8, %c384] : memref<4x768xf32, #tpu.memory_space<vmem>>, vector<4x256xf32>
    tpu.vector_store %arg6[%c0_8, %c384], %8 {strides = array<i32>} : memref<4x768xf32, #tpu.memory_space<vmem>>, vector<4x256xf32>,
    %c0_9 = arith.constant 0 : index
    %c0_10 = arith.constant 0 : index
    %10 = vector.load %arg1[%c0_9, %c0_10] : memref<4x512xf32, #tpu.memory_space<vmem>>, vector<1x512xf32>
    %c1_11 = arith.constant 1 : index
    %c0_12 = arith.constant 0 : index
    %11 = vector.load %arg1[%c1_11, %c0_12] : memref<4x512xf32, #tpu.memory_space<vmem>>, vector<1x512xf32>
    %c2 = arith.constant 2 : index
    %c0_13 = arith.constant 0 : index
    %12 = vector.load %arg1[%c2, %c0_13] : memref<4x512xf32, #tpu.memory_space<vmem>>, vector<1x512xf32>
    %c3 = arith.constant 3 : index
    %c0_14 = arith.constant 0 : index
    %13 = vector.load %arg1[%c3, %c0_14] : memref<4x512xf32, #tpu.memory_space<vmem>>, vector<1x512xf32>
    %c0_15 = arith.constant 0 : index
    %c111_16 = arith.constant 111 : index
    %14 = vector.load %arg6[%c0_15, %c111_16] : memref<4x768xf32, #tpu.memory_space<vmem>>, vector<4x512xf32>
    %15 = arith.mulf %10, %12 : vector<1x512xf32>
    %16 = vector.broadcast %15 : vector<1x512xf32> to vector<4x512xf32>
    %17 = arith.mulf %14, %16 : vector<4x512xf32>
    %c0_17 = arith.constant 0 : index
    %c0_18 = arith.constant 0 : index
    %18 = vector.load %arg7[%c0_17, %c0_18] : memref<36x512xf32, #tpu.memory_space<vmem>>, vector<4x512xf32>
    tpu.vector_store %arg7[%c0_17, %c0_18], %17 {strides = array<i32>} : memref<36x512xf32, #tpu.memory_space<vmem>>, vector<4x512xf32>,
    %c0_19 = arith.constant 0 : index
    %c112 = arith.constant 112 : index
    %19 = vector.load %arg6[%c0_19, %c112] : memref<4x768xf32, #tpu.memory_space<vmem>>, vector<4x512xf32>
    %20 = vector.broadcast %10 : vector<1x512xf32> to vector<4x512xf32>
    %21 = arith.mulf %19, %20 : vector<4x512xf32>
    %c4 = arith.constant 4 : index
    %c0_20 = arith.constant 0 : index
    %22 = vector.load %arg7[%c4, %c0_20] : memref<36x512xf32, #tpu.memory_space<vmem>>, vector<4x512xf32>
    tpu.vector_store %arg7[%c4, %c0_20], %21 {strides = array<i32>} : memref<36x512xf32, #tpu.memory_space<vmem>>, vector<4x512xf32>,
    %c0_21 = arith.constant 0 : index
    %c113 = arith.constant 113 : index
    %23 = vector.load %arg6[%c0_21, %c113] : memref<4x768xf32, #tpu.memory_space<vmem>>, vector<4x512xf32>
    %24 = arith.mulf %10, %13 : vector<1x512xf32>
    %25 = vector.broadcast %24 : vector<1x512xf32> to vector<4x512xf32>
    %26 = arith.mulf %23, %25 : vector<4x512xf32>
    %c8 = arith.constant 8 : index
    %c0_22 = arith.constant 0 : index
    %27 = vector.load %arg7[%c8, %c0_22] : memref<36x512xf32, #tpu.memory_space<vmem>>, vector<4x512xf32>
    tpu.vector_store %arg7[%c8, %c0_22], %26 {strides = array<i32>} : memref<36x512xf32, #tpu.memory_space<vmem>>, vector<4x512xf32>,
    %c0_23 = arith.constant 0 : index
    %c127 = arith.constant 127 : index
    %28 = vector.load %arg6[%c0_23, %c127] : memref<4x768xf32, #tpu.memory_space<vmem>>, vector<4x512xf32>
    %29 = vector.broadcast %12 : vector<1x512xf32> to vector<4x512xf32>
    %30 = arith.mulf %28, %29 : vector<4x512xf32>
    %c12 = arith.constant 12 : index
    %c0_24 = arith.constant 0 : index
    %31 = vector.load %arg7[%c12, %c0_24] : memref<36x512xf32, #tpu.memory_space<vmem>>, vector<4x512xf32>
    tpu.vector_store %arg7[%c12, %c0_24], %30 {strides = array<i32>} : memref<36x512xf32, #tpu.memory_space<vmem>>, vector<4x512xf32>,
    %c0_25 = arith.constant 0 : index
    %c128_26 = arith.constant 128 : index
    %32 = vector.load %arg6[%c0_25, %c128_26] : memref<4x768xf32, #tpu.memory_space<vmem>>, vector<4x512xf32>
    %c16 = arith.constant 16 : index
    %c0_27 = arith.constant 0 : index
    %33 = vector.load %arg7[%c16, %c0_27] : memref<36x512xf32, #tpu.memory_space<vmem>>, vector<4x512xf32>
    tpu.vector_store %arg7[%c16, %c0_27], %32 {strides = array<i32>} : memref<36x512xf32, #tpu.memory_space<vmem>>, vector<4x512xf32>,
    %c0_28 = arith.constant 0 : index
    %c129 = arith.constant 129 : index
    %34 = vector.load %arg6[%c0_28, %c129] : memref<4x768xf32, #tpu.memory_space<vmem>>, vector<4x512xf32>
    %35 = vector.broadcast %13 : vector<1x512xf32> to vector<4x512xf32>
    %36 = arith.mulf %34, %35 : vector<4x512xf32>
    %c20 = arith.constant 20 : index
    %c0_29 = arith.constant 0 : index
    %37 = vector.load %arg7[%c20, %c0_29] : memref<36x512xf32, #tpu.memory_space<vmem>>, vector<4x512xf32>
    tpu.vector_store %arg7[%c20, %c0_29], %36 {strides = array<i32>} : memref<36x512xf32, #tpu.memory_space<vmem>>, vector<4x512xf32>,
    %c0_30 = arith.constant 0 : index
    %c143 = arith.constant 143 : index
    %38 = vector.load %arg6[%c0_30, %c143] : memref<4x768xf32, #tpu.memory_space<vmem>>, vector<4x512xf32>
    %39 = arith.mulf %11, %12 : vector<1x512xf32>
    %40 = vector.broadcast %39 : vector<1x512xf32> to vector<4x512xf32>
    %41 = arith.mulf %38, %40 : vector<4x512xf32>
    %c24 = arith.constant 24 : index
    %c0_31 = arith.constant 0 : index
    %42 = vector.load %arg7[%c24, %c0_31] : memref<36x512xf32, #tpu.memory_space<vmem>>, vector<4x512xf32>
    tpu.vector_store %arg7[%c24, %c0_31], %41 {strides = array<i32>} : memref<36x512xf32, #tpu.memory_space<vmem>>, vector<4x512xf32>,
    %c0_32 = arith.constant 0 : index
    %c144 = arith.constant 144 : index
    %43 = vector.load %arg6[%c0_32, %c144] : memref<4x768xf32, #tpu.memory_space<vmem>>, vector<4x512xf32>
    %44 = vector.broadcast %11 : vector<1x512xf32> to vector<4x512xf32>
    %45 = arith.mulf %43, %44 : vector<4x512xf32>
    %c28 = arith.constant 28 : index
    %c0_33 = arith.constant 0 : index
    %46 = vector.load %arg7[%c28, %c0_33] : memref<36x512xf32, #tpu.memory_space<vmem>>, vector<4x512xf32>
    tpu.vector_store %arg7[%c28, %c0_33], %45 {strides = array<i32>} : memref<36x512xf32, #tpu.memory_space<vmem>>, vector<4x512xf32>,
    %c0_34 = arith.constant 0 : index
    %c145 = arith.constant 145 : index
    %47 = vector.load %arg6[%c0_34, %c145] : memref<4x768xf32, #tpu.memory_space<vmem>>, vector<4x512xf32>
    %48 = arith.mulf %11, %13 : vector<1x512xf32>
    %49 = vector.broadcast %48 : vector<1x512xf32> to vector<4x512xf32>
    %50 = arith.mulf %47, %49 : vector<4x512xf32>
    %c32 = arith.constant 32 : index
    %c0_35 = arith.constant 0 : index
    %51 = vector.load %arg7[%c32, %c0_35] : memref<36x512xf32, #tpu.memory_space<vmem>>, vector<4x512xf32>
    tpu.vector_store %arg7[%c32, %c0_35], %50 {strides = array<i32>} : memref<36x512xf32, #tpu.memory_space<vmem>>, vector<4x512xf32>,
    %c0_36 = arith.constant 0 : index
    %c0_37 = arith.constant 0 : index
    %52 = vector.load %arg3[%c0_36, %c0_37] : memref<4x36xf32, #tpu.memory_space<vmem>>, vector<4x36xf32>
    %c0_38 = arith.constant 0 : index
    %c0_39 = arith.constant 0 : index
    %53 = vector.load %arg7[%c0_38, %c0_39] : memref<36x512xf32, #tpu.memory_space<vmem>>, vector<36x512xf32>
    %cst_40 = arith.constant dense<0.000000e+00> : vector<4x512xf32>
    %54 = tpu.matmul %52, %53, %cst_40 {dimension_numbers = #tpu.dot_dimension_numbers<[1], [0], [0], [1], [0, 0, 1, 1], [], []>} : vector<4x36xf32>, vector<36x512xf32>, vector<4x512xf32> -> vector<4x512xf32>
    %cst_41 = arith.constant 0.000000e+00 : f32
    %55 = vector.broadcast %cst_41 : f32 to vector<4x512xf32>
    %56 = arith.maximumf %54, %55 : vector<4x512xf32>
    %c0_42 = arith.constant 0 : index
    %c0_43 = arith.constant 0 : index
    %57 = vector.load %arg4[%c0_42, %c0_43] : memref<4x4xf32, #tpu.memory_space<vmem>>, vector<4x4xf32>
    %cst_44 = arith.constant dense<0.000000e+00> : vector<4x512xf32>
    %58 = tpu.matmul %57, %56, %cst_44 {dimension_numbers = #tpu.dot_dimension_numbers<[1], [0], [0], [1], [0, 0, 1, 1], [], []>} : vector<4x4xf32>, vector<4x512xf32>, vector<4x512xf32> -> vector<4x512xf32>
    %c0_45 = arith.constant 0 : index
    %c0_46 = arith.constant 0 : index
    %c0_47 = arith.constant 0 : index
    %59 = vector.load %arg2[%c0_45, %c0_46, %c0_47] : memref<2x4x256xf32, #tpu.memory_space<vmem>>, vector<1x4x256xf32>
    %60 = vector.shape_cast %59 : vector<1x4x256xf32> to vector<4x256xf32>
    %61 = vector.extract_strided_slice %58 {offsets = [0, 0], sizes = [4, 256], strides = [1, 1]} : vector<4x512xf32> to vector<4x256xf32>
    %62 = arith.addf %60, %61 : vector<4x256xf32>
    %c0_48 = arith.constant 0 : index
    %c0_49 = arith.constant 0 : index
    %c0_50 = arith.constant 0 : index
    %63 = vector.load %arg5[%c0_48, %c0_49, %c0_50] : memref<2x4x256xf32, #tpu.memory_space<vmem>>, vector<1x4x256xf32>
    %64 = vector.shape_cast %63 : vector<1x4x256xf32> to vector<4x256xf32>
    %65 = vector.shape_cast %62 : vector<4x256xf32> to vector<1x4x256xf32>
    tpu.vector_store %arg5[%c0_48, %c0_49, %c0_50], %65 {strides = array<i32>} : memref<2x4x256xf32, #tpu.memory_space<vmem>>, vector<1x4x256xf32>,
    %c1_51 = arith.constant 1 : index
    %c0_52 = arith.constant 0 : index
    %c0_53 = arith.constant 0 : index
    %66 = vector.load %arg2[%c1_51, %c0_52, %c0_53] : memref<2x4x256xf32, #tpu.memory_space<vmem>>, vector<1x4x256xf32>
    %67 = vector.shape_cast %66 : vector<1x4x256xf32> to vector<4x256xf32>
    %68 = vector.extract_strided_slice %58 {offsets = [0, 256], sizes = [4, 256], strides = [1, 1]} : vector<4x512xf32> to vector<4x256xf32>
    %69 = arith.addf %67, %68 : vector<4x256xf32>
    %c1_54 = arith.constant 1 : index
    %c0_55 = arith.constant 0 : index
    %c0_56 = arith.constant 0 : index
    %70 = vector.load %arg5[%c1_54, %c0_55, %c0_56] : memref<2x4x256xf32, #tpu.memory_space<vmem>>, vector<1x4x256xf32>
    %71 = vector.shape_cast %70 : vector<1x4x256xf32> to vector<4x256xf32>
    %72 = vector.shape_cast %69 : vector<4x256xf32> to vector<1x4x256xf32>
    tpu.vector_store %arg5[%c1_54, %c0_55, %c0_56], %72 {strides = array<i32>} : memref<2x4x256xf32, #tpu.memory_space<vmem>>, vector<1x4x256xf32>,
    return
  }
  func.func @transform_0(%arg0: i32) -> (i32, i32) {
    %c0_i32 = arith.constant 0 : i32
    %c0_i32_0 = arith.constant 0 : i32
    %c0_i32_1 = arith.constant 0 : i32
    return %c0_i32, %c0_i32_0 : i32, i32
  }
  func.func @transform_1(%arg0: i32) -> (i32, i32, i32) {
    %c0_i32 = arith.constant 0 : i32
    %c0_i32_0 = arith.constant 0 : i32
    %c0_i32_1 = arith.constant 0 : i32
    return %arg0, %c0_i32, %c0_i32_0 : i32, i32, i32
  }
  func.func @transform_2(%arg0: i32) -> (i32, i32) {
    %c0_i32 = arith.constant 0 : i32
    %c0_i32_0 = arith.constant 0 : i32
    %c0_i32_1 = arith.constant 0 : i32
    return %c0_i32, %c0_i32_0 : i32, i32
  }
  func.func @transform_3(%arg0: i32) -> (i32, i32) {
    %c0_i32 = arith.constant 0 : i32
    %c0_i32_0 = arith.constant 0 : i32
    %c0_i32_1 = arith.constant 0 : i32
    return %c0_i32, %c0_i32_0 : i32, i32
  }
  func.func @transform_4(%arg0: i32) -> (i32, i32, i32) {
    %c0_i32 = arith.constant 0 : i32
    %c0_i32_0 = arith.constant 0 : i32
    %c0_i32_1 = arith.constant 0 : i32
    return %arg0, %c0_i32, %c0_i32_0 : i32, i32, i32
  }
}

</mosaic_0001>

<bundles_post_ra>
// kernel: tpu_custom_call.1
= control target key start
LH: loop header
LB: loop body
LE: loop exit
PB: predicated region body
PF: predicated region fallthrough
CT: control target
= control target key end

     0   :  { %9 = vsyncpa [#allocation5], 0  ;;  %s1450_s0 = inlined_call_operand.hbm [shape: f32[4,512], index: 0, kind: input, shape index: {}]   ;;  %s1451_s1 = inlined_call_operand.hbm [shape: f32[2,4,256], index: 1, kind: input, shape index: {}]   ;;  %s1452_s2 = inlined_call_operand.vmem [shape: f32[4,36], index: 2, kind: input, shape index: {}]   ;;  %s1453_s3 = inlined_call_operand.vmem [shape: f32[4,4], index: 3, kind: input, shape index: {}]   ;;  %s1454_s4 = inlined_call_operand.hbm [shape: f32[2,4,256], index: 4, kind: output, shape index: {}]  }
   0x1   :  { %10 = vsyncpa [#allocation8], 0 }
   0x2   :  { %11 = vsyncpa [#allocation6], 0  ;;  %s1090_s15 = smov [#allocation4]   ;;  %s1091_s17 = smov [#allocation7]  }
   0x3   :  { %s18_s16 = sshll.u32 %s1090_s15, 4  ;;  %s27_s18 = sshll.u32 %s1091_s17, 4  ;;  %s19_s16 = int_to_ptr.vmem [resolvable:$true] %s18_s16  ;;  %s1129_s18 = int_to_ptr.vmem [resolvable:$true] %s27_s18 }
   0x4   :  { %s1018_s21 = scalar_lea.hbm %s1450_s0, 256 }
   0x5   :  { %p1019_p0 = scmp.ne.s32.totalorder %s1450_s0, %s1018_s21  ;;  %p1022_p1 = scmp.lt.u32.totalorder %s1018_s21, %s1450_s0 }
   0x7   :  { %p1024_p2 = pnand %p1022_p1, %p1019_p0 }
   0x9   :  { %1027 = shalt.err (!%p1024_p2)
}
   0xa   :  { %s1028_s26 = scalar_lea.vmem %s19_s16, 256  ;;  %p1033_p4 = scmp.lt.s32.totalorder %s19_s16, %s19_s16 }
   0xb   :  { %p1029_p3 = scmp.ne.s32.totalorder %s19_s16, %s1028_s26  ;;  %p1034_p5 = scmp.lt.s32.totalorder %s1028_s26, %s1028_s26 }
   0xd   :  { %p1035_p6 = por %p1034_p5, %p1033_p4 }
   0xf   :  { %p1036_p7 = pnand %p1035_p6, %p1029_p3 }
  0x11   :  { %1039 = shalt.err (!%p1036_p7)
}
  0x12   :  { %21 = dma.hbm_to_vmem [thread:$0]  %s1450_s0, 256, %s19_s16, [#allocation5]  }
  0x13   :  { %s1040_s5 = scalar_lea.hbm %s1451_s1, 256 }
  0x14   :  { %p1041_p8 = scmp.ne.s32.totalorder %s1451_s1, %s1040_s5  ;;  %p1044_p9 = scmp.lt.u32.totalorder %s1040_s5, %s1451_s1 }
  0x16   :  { %p1046_p10 = pnand %p1044_p9, %p1041_p8 }
  0x18   :  { %1049 = shalt.err (!%p1046_p10)
}
  0x19   :  { %s1050_s10 = scalar_lea.vmem %s1129_s18, 256  ;;  %p1055_p12 = scmp.lt.s32.totalorder %s1129_s18, %s1129_s18 }
  0x1a   :  { %p1051_p11 = scmp.ne.s32.totalorder %s1129_s18, %s1050_s10  ;;  %p1056_p13 = scmp.lt.s32.totalorder %s1050_s10, %s1050_s10 }
  0x1c   :  { %p1057_p0 = por %p1056_p13, %p1055_p12 }
  0x1e   :  { %p1058_p1 = pnand %p1057_p0, %p1051_p11 }
  0x20   :  { %1061 = shalt.err (!%p1058_p1)
}
  0x21   :  { %s1092_s0 = smov 128   ;;  %s1093_s11 = smov 8  }
  0x22   :  { %33 = dma.hbm_to_vmem [thread:$0]  %s1451_s1, 256, %s1129_s18, [#allocation8], %s1092_s0, %s1092_s0, %s1093_s11  }
  0x23   :  { %1084 = dma.done.wait [#allocation5], 256  }
  0x24   :  { %1085 = vsyncadd [#allocation5], 4294967040 }
  0x25   :  { %1086 = dma.done.wait [#allocation8], 256  }
  0x26   :  { %1087 = vsyncadd [#allocation8], 4294967040  ;;  %v65_v0 = vlaneseq  ;;  %vm44_vm0 = vcmask 1044344   ;;  %v1094_v1 = vmov 0.0   ;;  %v1180_v17 = vld [vmem:[#allocation7] sm:$0xff]  ;;  %v1182_v18 = vld [vmem:[#allocation7 + $0x8] sm:$0xff] }
  0x27   :  { %45 = vst.msk [vmem:[#allocation2] sm:$0xf] %vm44_vm0, %v1094_v1  ;;  %702 = vmatprep.mubr.f32.mxu0 %v1094_v1  ;;  %773 = vmatprep.mubr.f32.mxu1 %v1094_v1  ;;  %v57_v7 = vld [vmem:[#allocation4 + $0x2] ss:$4 sm:$0xf]  ;;  %49 = vst [vmem:[#allocation2 + $0x4] sm:$0xff] %v1180_v17 }
  0x28   :  { %v66_v2 = vshrl.u32 %v65_v0, 7  ;;  %v53_v8 = vld [vmem:[#allocation4] ss:$4 sm:$0xf]  ;;  %52 = vst [vmem:[#allocation2 + $0xc] sm:$0xff] %v1182_v18  ;;  %s1095_s1 = smov 127  }
  0x29   :  { %v59_v13 = vld [vmem:[#allocation4 + $0x3] ss:$4 sm:$0xf]  ;;  %v63_v16 = vmul.f32 %v57_v7, %v53_v8  ;;  %337 = vst [vmem:[#allocation3 + $0x40] sm:$0xf] %v1180_v17  ;;  %s1096_s14 = smov 112  }
  0x2a   :  { %v1166_v3 = vsub.s32 0, %v66_v2  ;;  %v1168_v4 = vsub.s32 1, %v66_v2  ;;  %v1170_v5 = vsub.s32 2, %v66_v2  ;;  %v1172_v6 = vsub.s32 3, %v66_v2  ;;  %339 = vst [vmem:[#allocation3 + $0x50] sm:$0xf] %v1182_v18 }
  0x2b   :  { %v198_v25 = vmul.f32 %v59_v13, %v53_v8  ;;  %s1097_s15 = smov 111   ;;  %v55_v36 = vld [vmem:[#allocation4 + $0x1] ss:$4 sm:$0xf]  ;;  %vm46_vm1 = vcmask 134144   ;;  %s1098_s16 = smov 113  }
  0x2c   :  { %v269_v9 = vrot.slane %v57_v7, %v1166_v3  ;;  %v273_v10 = vrot.slane %v57_v7, %v1168_v4  ;;  %v135_v11 = vrot.slane %v53_v8, %v1166_v3  ;;  %v139_v12 = vrot.slane %v53_v8, %v1168_v4  ;;  %47 = vst.msk [vmem:[#allocation2 + $0x14] sm:$0xf] %vm46_vm1, %v1094_v1  ;;  %s1099_s17 = smov 1   ;;  %s1100_s18 = smov 15  }
  0x2d   :  { %v143_v14 = vrot.slane %v53_v8, %v1170_v5  ;;  %v147_v15 = vrot.slane %v53_v8, %v1172_v6  ;;  %v277_v21 = vrot.slane %v57_v7, %v1170_v5  ;;  %v68_v22 = vrot.slane %v63_v16, %v1166_v3  ;;  %s1101_s19 = smov 16   ;;  %s1102_s20 = smov 17  }
  0x2e   :  { %v282_v19 = vcombine.low %v269_v9, %v273_v10  ;;  %v148_v20 = vcombine.low %v135_v11, %v139_v12  ;;  %v72_v23 = vrot.slane %v63_v16, %v1168_v4  ;;  %v281_v24 = vrot.slane %v57_v7, %v1172_v6 }
  0x2f   :  { %v149_v26 = vcombine.low %v143_v14, %v147_v15  ;;  %v76_v27 = vrot.slane %v63_v16, %v1170_v5  ;;  %v80_v28 = vrot.slane %v63_v16, %v1172_v6  ;;  %v211_v31 = vrot.slane %v198_v25, %v1170_v5 }
  0x30   :  { %284 = vrot.lane.b32.xlu0 %v282_v19, %s1095_s1  ;;  %150 = vrot.lane.b32.xlu1 %v148_v20, %s1096_s14  ;;  %v81_v29 = vcombine.low %v68_v22, %v72_v23  ;;  %v283_v30 = vcombine.low %v277_v21, %v281_v24  ;;  %v215_v32 = vrot.slane %v198_v25, %v1172_v6  ;;  %vm156_vm2 = vcmask 916480   ;;  %v62_v19 = vld [vmem:[#allocation2 + $0x10] sm:$0xf] }
  0x31   :  { %v82_v33 = vcombine.low %v76_v27, %v80_v28  ;;  %v203_v34 = vrot.slane %v198_v25, %v1166_v3  ;;  %v207_v35 = vrot.slane %v198_v25, %v1168_v4  ;;  %v356_v37 = vrot.slane %v59_v13, %v1170_v5  ;;  %v197_v27 = vld [vmem:[#allocation2 + $0x10] sm:$0xf] }
  0x32   :  { %v360_v38 = vrot.slane %v59_v13, %v1172_v6  ;;  %v348_v39 = vrot.slane %v59_v13, %v1166_v3  ;;  %v352_v40 = vrot.slane %v59_v13, %v1168_v4  ;;  %v409_v41 = vmul.f32 %v57_v7, %v55_v36 }
  0x33   :  { %v217_v42 = vcombine.low %v211_v31, %v215_v32  ;;  %v216_v43 = vcombine.low %v203_v34, %v207_v35  ;;  %v486_v50 = vrot.slane %v55_v36, %v1170_v5  ;;  %v490_v51 = vrot.slane %v55_v36, %v1172_v6  ;;  %v343_v35 = vld [vmem:[#allocation2 + $0x14] sm:$0xf] }
  0x34   :  { %152 = vrot.lane.b32.xlu1 %v149_v26, %s1096_s14  ;;  %83 = vrot.lane.b32.xlu0 %v81_v29, %s1097_s15  ;;  %v362_v44 = vcombine.low %v356_v37, %v360_v38  ;;  %v361_v45 = vcombine.low %v348_v39, %v352_v40  ;;  %v422_v46 = vrot.slane %v409_v41, %v1170_v5  ;;  %vm290_vm3 = vcmask 1039360   ;;  %v264_v26 = vld [vmem:[#allocation2 + $0x10] sm:$0xf] }
  0x35   :  { %v426_v47 = vrot.slane %v409_v41, %v1172_v6  ;;  %v414_v48 = vrot.slane %v409_v41, %v1166_v3  ;;  %v418_v49 = vrot.slane %v409_v41, %v1168_v4  ;;  %v478_v52 = vrot.slane %v55_v36, %v1166_v3 }
  0x36   :  { %v482_v53 = vrot.slane %v55_v36, %v1168_v4  ;;  %v539_v54 = vmul.f32 %v59_v13, %v55_v36  ;;  %v492_v57 = vcombine.low %v486_v50, %v490_v51  ;;  %v130_v13 = vld [vmem:[#allocation2 + $0x10] sm:$0xf]  ;;  %vm316_vm4 = vcmask 7168  }
  0x37   :  { %v428_v55 = vcombine.low %v422_v46, %v426_v47  ;;  %v427_v56 = vcombine.low %v414_v48, %v418_v49  ;;  %vm182_vm5 = vcmask 130048   ;;  %vm91_vm6 = vcmask 1043456   ;;  %v408_v48 = vld [vmem:[#allocation2 + $0x14] sm:$0xf] }
  0x38   :  { %286 = vrot.lane.b32.xlu1 %v283_v30, %s1095_s1  ;;  %85 = vrot.lane.b32.xlu0 %v82_v33, %s1097_s15  ;;  %v491_v58 = vcombine.low %v478_v52, %v482_v53  ;;  %v544_v59 = vrot.slane %v539_v54, %v1166_v3  ;;  %v548_v60 = vrot.slane %v539_v54, %v1168_v4  ;;  %v1233_v4 = vld [vmem:[#allocation2] sm:$0xff]  ;;  %v473_v49 = vld [vmem:[#allocation2 + $0x14] sm:$0xf]  ;;  %vm249_vm7 = vcmask 121856  }
  0x39   :  { %v552_v61 = vrot.slane %v539_v54, %v1170_v5  ;;  %v556_v62 = vrot.slane %v539_v54, %v1172_v6  ;;  %vm89_vm8 = vcmask 908288   ;;  %vm224_vm9 = vcmask 924672  }
  0x3a   :  { %v557_v63 = vcombine.low %v544_v59, %v548_v60  ;;  %v129_v59 = vld [vmem:[#allocation2 + $0x8] sm:$0xff]  ;;  %vm115_vm10 = vcmask 138240   ;;  %vm622_vm11 = vcmask 293888   ;;  %vm785_vm12 = vcmask 31744  }
  0x3b   :  { %v558_v0 = vcombine.low %v552_v61, %v556_v62 }
  0x3c   :  { %220 = vrot.lane.b32.xlu1 %v217_v42, %s1098_s16  ;;  %218 = vrot.lane.b32.xlu0 %v216_v43, %s1098_s16 }
  0x40   :  { %365 = vrot.lane.b32.xlu1 %v362_v44, %s1099_s17  ;;  %363 = vrot.lane.b32.xlu0 %v361_v45, %s1099_s17 }
  0x44   :  { %431 = vrot.lane.b32.xlu1 %v428_v55, %s1100_s18  ;;  %429 = vrot.lane.b32.xlu0 %v427_v56, %s1100_s18 }
  0x48   :  { %495 = vrot.lane.b32.xlu1 %v492_v57, %s1101_s19  ;;  %493 = vrot.lane.b32.xlu0 %v491_v58, %s1101_s19  ;;  %v334_v58 = vcombine.high %v1182_v18, %v1182_v18 }
  0x4a   :  { %340 = vst [vmem:[#allocation3 + $0x58] sm:$0xf] %v334_v58 }
  0x4c   :  { %559 = vrot.lane.b32.xlu0 %v557_v63, %s1102_s20  ;;  %561 = vrot.lane.b32.xlu1 %v558_v0, %s1102_s20 }
  0xa2   :  { %v1231_v2 = vpop.permute.xlu0 %284  ;;  %v151_v3 = vpop.permute.xlu1 %150 }
  0xa3   :  { %v288_v5 = vrot.slane %v1231_v2, 4  ;;  %v154_v6 = vrot.slane %v151_v3, 4 }
  0xa5   :  { %v157_v7 = vsel %vm156_vm2, %v154_v6, %v151_v3  ;;  %v291_v11 = vsel %vm290_vm3, %v288_v5, %v1231_v2 }
  0xa6   :  { %v1238_v8 = vmul.f32 %v1233_v4, %v157_v7  ;;  %v153_v9 = vpop.permute.xlu1 %152  ;;  %v1240_v10 = vpop.permute.xlu0 %83  ;;  %v1249_v14 = vmul.f32 %v291_v11, %v1233_v4 }
  0xa7   :  { %v155_v12 = vrot.slane %v153_v9, 4 }
  0xa8   :  { %174 = vrot.lane.b32.xlu0 %v1238_v8, %s1101_s19 }
  0xa9   :  { %v165_v20 = vmul.f32 %v155_v12, %v130_v13  ;;  %v158_v47 = vsel %vm91_vm6, %v154_v6, %v155_v12  ;;  %v303_v12 = vcombine.low %v1249_v14, %v1249_v14 }
  0xaa   :  { %v287_v15 = vpop.permute.xlu1 %286  ;;  %v1251_v16 = vpop.permute.xlu0 %85  ;;  %v159_v54 = vsel %vm156_vm2, %v158_v47, %v153_v9  ;;  %v87_v9 = vrot.slane %v1240_v10, 4 }
  0xab   :  { %v88_v21 = vrot.slane %v1251_v16, 4  ;;  %v171_v25 = vcombine.low %v165_v20, %v165_v20  ;;  %v289_v28 = vrot.slane %v287_v15, 4  ;;  %v164_v60 = vmul.f32 %v159_v54, %v129_v59 }
  0xac   :  { %308 = vrot.lane.b32.xlu0 %v1249_v14, %s1099_s17 }
  0xad   :  { %v99_v22 = vmul.f32 %v88_v21, %v62_v19  ;;  %v299_v32 = vmul.f32 %v289_v28, %v264_v26  ;;  %v292_v57 = vsel %vm91_vm6, %v288_v5, %v289_v28  ;;  %v169_v5 = vcombine.low %v1238_v8, %v1238_v8 }
  0xae   :  { %v1258_v23 = vpop.permute.xlu1 %220  ;;  %v1260_v24 = vpop.permute.xlu0 %218  ;;  %v293_v61 = vsel %vm290_vm3, %v292_v57, %v287_v15  ;;  %v90_v15 = vsel %vm89_vm8, %v87_v9, %v1240_v10  ;;  %v92_v19 = vsel %vm91_vm6, %v87_v9, %v88_v21  ;;  %v170_v28 = vcombine.low %v164_v60, %v164_v60 }
  0xaf   :  { %113 = vrot.lane.b32.xlu1 %v99_v22, %s1102_s20  ;;  %v223_v29 = vrot.slane %v1258_v23, 4  ;;  %v305_v42 = vcombine.low %v299_v32, %v299_v32  ;;  %v298_v0 = vmul.f32 %v293_v61, %v129_v59  ;;  %v222_v20 = vrot.slane %v1260_v24, 4 }
  0xb0   :  { %v97_v22 = vmul.f32 %v1233_v4, %v90_v15 }
  0xb1   :  { %v233_v33 = vmul.f32 %v223_v29, %v197_v27  ;;  %v225_v10 = vsel %vm224_vm9, %v222_v20, %v1260_v24  ;;  %v226_v27 = vsel %vm91_vm6, %v222_v20, %v223_v29 }
  0xb2   :  { %v366_v30 = vpop.permute.xlu1 %365  ;;  %v364_v31 = vpop.permute.xlu0 %363  ;;  %v231_v26 = vmul.f32 %v1233_v4, %v225_v10  ;;  %v227_v24 = vsel %vm224_vm9, %v226_v27, %v1258_v23 }
  0xb3   :  { %v367_v34 = vrot.slane %v364_v31, 4  ;;  %180 = vrot.lane.b32.xlu1 %v171_v25, %s1101_s19  ;;  %v368_v36 = vrot.slane %v366_v30, 4  ;;  %v93_v25 = vsel %vm89_vm8, %v92_v19, %v1251_v16  ;;  %v232_v4 = vmul.f32 %v227_v24, %v129_v59 }
  0xb4   :  { %v98_v21 = vmul.f32 %v129_v59, %v93_v25 }
  0xb5   :  { %v369_v37 = vsel %vm316_vm4, %v367_v34, %v364_v31  ;;  %v377_v41 = vmul.f32 %v368_v36, %v343_v35  ;;  %v370_v63 = vsel %vm91_vm6, %v367_v34, %v368_v36  ;;  %v304_v31 = vcombine.low %v298_v0, %v298_v0 }
  0xb6   :  { %v1269_v38 = vmul.f32 %v369_v37, %v1180_v17  ;;  %v1271_v39 = vpop.permute.xlu1 %431  ;;  %v1273_v40 = vpop.permute.xlu0 %429  ;;  %v371_v2 = vsel %vm316_vm4, %v370_v63, %v366_v30  ;;  %v333_v30 = vcombine.high %v1180_v17, %v1180_v17  ;;  %v104_v47 = vcombine.high %v98_v21, %v98_v21 }
  0xb7   :  { %247 = vrot.lane.b32.xlu1 %v233_v33, %s1100_s18  ;;  %v383_v46 = vcombine.low %v377_v41, %v377_v41  ;;  %v434_v50 = vrot.slane %v1271_v39, 4  ;;  %v433_v6 = vrot.slane %v1273_v40, 4  ;;  %v376_v7 = vmul.f32 %v371_v2, %v1182_v18 }
  0xb8   :  { %386 = vrot.lane.b32.xlu0 %v1269_v38, %s1095_s1  ;;  %v381_v16 = vcombine.low %v1269_v38, %v1269_v38  ;;  %338 = vst [vmem:[#allocation3 + $0x48] sm:$0xf] %v333_v30  ;;  %v103_v33 = vcombine.high %v97_v22, %v97_v22  ;;  %v237_v38 = vcombine.high %v231_v26, %v231_v26 }
  0xb9   :  { %v443_v55 = vmul.f32 %v434_v50, %v408_v48  ;;  %v435_v8 = vsel %vm249_vm7, %v433_v6, %v1273_v40  ;;  %v436_v23 = vsel %vm91_vm6, %v433_v6, %v434_v50  ;;  %v382_v36 = vcombine.low %v376_v7, %v376_v7 }
  0xba   :  { %v496_v43 = vpop.permute.xlu1 %495  ;;  %v494_v44 = vpop.permute.xlu0 %493  ;;  %v441_v14 = vmul.f32 %v435_v8, %v1180_v17  ;;  %v437_v40 = vsel %vm249_vm7, %v436_v23, %v1271_v39  ;;  %v238_v50 = vcombine.high %v232_v4, %v232_v4 }
  0xbb   :  { %v497_v45 = vrot.slane %v494_v44, 4  ;;  %314 = vrot.lane.b32.xlu1 %v305_v42, %s1099_s17  ;;  %v498_v51 = vrot.slane %v496_v43, 4  ;;  %v442_v42 = vmul.f32 %v437_v40, %v1182_v18 }
  0xbd   :  { %v499_v52 = vsel %vm182_vm5, %v497_v45, %v494_v44  ;;  %v507_v56 = vmul.f32 %v498_v51, %v473_v49  ;;  %v500_v3 = vsel %vm91_vm6, %v497_v45, %v498_v51  ;;  %v447_v44 = vcombine.high %v441_v14, %v441_v14 }
  0xbe   :  { %v505_v53 = vmul.f32 %v499_v52, %v1180_v17  ;;  %v501_v11 = vsel %vm182_vm5, %v500_v3, %v496_v43  ;;  %v560_v32 = vpop.permute.xlu0 %559  ;;  %v562_v34 = vpop.permute.xlu1 %561  ;;  %v448_v52 = vcombine.high %v442_v42, %v442_v42 }
  0xbf   :  { %392 = vrot.lane.b32.xlu1 %v383_v46, %s1095_s1  ;;  %v513_v62 = vcombine.low %v507_v56, %v507_v56  ;;  %v506_v13 = vmul.f32 %v501_v11, %v1182_v18  ;;  %v563_v35 = vrot.slane %v560_v32, 4  ;;  %v564_v37 = vrot.slane %v562_v34, 4 }
  0xc0   :  { %516 = vrot.lane.b32.xlu0 %v505_v53, %s1096_s14  ;;  %v511_v29 = vcombine.low %v505_v53, %v505_v53  ;;  %v538_v53 = vld [vmem:[#allocation2 + $0x14] sm:$0xf] }
  0xc1   :  { %v565_v41 = vsel %vm115_vm10, %v563_v35, %v560_v32  ;;  %v566_v43 = vsel %vm91_vm6, %v563_v35, %v564_v37  ;;  %v512_v39 = vcombine.low %v506_v13, %v506_v13  ;;  %v573_v54 = vmul.f32 %v564_v37, %v538_v53 }
  0xc2   :  { %v571_v45 = vmul.f32 %v565_v41, %v1180_v17  ;;  %v567_v46 = vsel %vm115_vm10, %v566_v43, %v562_v34 }
  0xc3   :  { %457 = vrot.lane.b32.xlu1 %v443_v55, %s1098_s16  ;;  %v572_v48 = vmul.f32 %v567_v46, %v1182_v18 }
  0xc4   :  { %178 = vrot.lane.b32.xlu0 %v164_v60, %s1101_s19  ;;  %v577_v49 = vcombine.high %v571_v45, %v571_v45 }
  0xc5   :  { %v578_v51 = vcombine.high %v572_v48, %v572_v48 }
  0xc7   :  { %522 = vrot.lane.b32.xlu1 %v513_v62, %s1096_s14 }
  0xc8   :  { %312 = vrot.lane.b32.xlu0 %v298_v0, %s1099_s17 }
  0xcb   :  { %172 = vrot.lane.b32.xlu1 %v169_v5, %s1101_s19 }
  0xcc   :  { %390 = vrot.lane.b32.xlu0 %v376_v7, %s1095_s1 }
  0xcf   :  { %306 = vrot.lane.b32.xlu1 %v303_v12, %s1099_s17 }
  0xd0   :  { %520 = vrot.lane.b32.xlu0 %v506_v13, %s1096_s14 }
  0xd3   :  { %449 = vrot.lane.b32.xlu1 %v441_v14, %s1098_s16 }
  0xd4   :  { %105 = vrot.lane.b32.xlu0 %v97_v22, %s1102_s20 }
  0xd7   :  { %109 = vrot.lane.b32.xlu1 %v98_v21, %s1102_s20 }
  0xd8   :  { %239 = vrot.lane.b32.xlu0 %v231_v26, %s1100_s18 }
  0xdb   :  { %176 = vrot.lane.b32.xlu1 %v170_v28, %s1101_s19 }
  0xdc   :  { %384 = vrot.lane.b32.xlu0 %v381_v16, %s1095_s1 }
  0xdf   :  { %243 = vrot.lane.b32.xlu1 %v232_v4, %s1100_s18 }
  0xe0   :  { %514 = vrot.lane.b32.xlu0 %v511_v29, %s1096_s14 }
  0xe3   :  { %310 = vrot.lane.b32.xlu1 %v304_v31, %s1099_s17 }
  0xe4   :  { %107 = vrot.lane.b32.xlu0 %v103_v33, %s1102_s20 }
  0xe7   :  { %388 = vrot.lane.b32.xlu1 %v382_v36, %s1095_s1 }
  0xe8   :  { %241 = vrot.lane.b32.xlu0 %v237_v38, %s1100_s18 }
  0xeb   :  { %453 = vrot.lane.b32.xlu1 %v442_v42, %s1098_s16 }
  0xec   :  { %451 = vrot.lane.b32.xlu0 %v447_v44, %s1098_s16 }
  0xef   :  { %518 = vrot.lane.b32.xlu1 %v512_v39, %s1096_s14 }
  0xf0   :  { %111 = vrot.lane.b32.xlu0 %v104_v47, %s1102_s20 }
  0xf3   :  { %581 = vrot.lane.b32.xlu1 %v577_v49, %s1097_s15 }
  0xf4   :  { %245 = vrot.lane.b32.xlu0 %v238_v50, %s1100_s18 }
  0xf7   :  { %585 = vrot.lane.b32.xlu1 %v578_v51, %s1097_s15 }
  0xf8   :  { %455 = vrot.lane.b32.xlu0 %v448_v52, %s1098_s16 }
  0xfb   :  { %579 = vrot.lane.b32.xlu1 %v571_v45, %s1097_s15 }
  0xfc   :  { %583 = vrot.lane.b32.xlu0 %v572_v48, %s1097_s15 }
 0x100   :  { %587 = vrot.lane.b32.xlu0 %v573_v54, %s1097_s15 }
 0x11a   :  { %v175_v56 = vpop.permute.xlu0 %174 }
 0x11e   :  { %v309_v59 = vpop.permute.xlu0 %308 }
 0x121   :  { %v1372_v55 = vpop.permute.xlu1 %113 }
 0x125   :  { %v181_v57 = vpop.permute.xlu1 %180 }
 0x129   :  { %v1374_v58 = vpop.permute.xlu1 %247 }
 0x12a   :  { %v387_v61 = vpop.permute.xlu0 %386 }
 0x12d   :  { %v315_v60 = vpop.permute.xlu1 %314 }
 0x131   :  { %v393_v62 = vpop.permute.xlu1 %392 }
 0x132   :  { %v1376_v63 = vpop.permute.xlu0 %516 }
 0x135   :  { %v1378_v0 = vpop.permute.xlu1 %457 }
 0x136   :  { %v179_v2 = vpop.permute.xlu0 %178 }
 0x137   :  { %v186_v3 = vsel %vm182_vm5, %v179_v2, %v181_v57 }
 0x138   :  { %194 = vst [vmem:[#allocation3 + $0x18] sm:$0xf0] %v186_v3 }
 0x139   :  { %v523_v5 = vpop.permute.xlu1 %522 }
 0x13a   :  { %v313_v6 = vpop.permute.xlu0 %312 }
 0x13b   :  { %v320_v7 = vsel %vm316_vm4, %v313_v6, %v315_v60 }
 0x13c   :  { %328 = vst [vmem:[#allocation3 + $0x38] sm:$0xf0] %v320_v7 }
 0x13d   :  { %v173_v9 = vpop.permute.xlu1 %172 }
 0x13e   :  { %v183_v11 = vsel %vm182_vm5, %v173_v9, %v175_v56  ;;  %v391_v12 = vpop.permute.xlu0 %390 }
 0x13f   :  { %191 = vst [vmem:[#allocation3] sm:$0xf0] %v183_v11  ;;  %v397_v8 = vsel %vm290_vm3, %v391_v12, %v393_v62 }
 0x140   :  { %405 = vst [vmem:[#allocation3 + $0x58] sm:$0xf0] %v397_v8 }
 0x141   :  { %v307_v13 = vpop.permute.xlu1 %306 }
 0x142   :  { %v317_v15 = vsel %vm316_vm4, %v307_v13, %v309_v59  ;;  %v521_v19 = vpop.permute.xlu0 %520 }
 0x143   :  { %325 = vst [vmem:[#allocation3 + $0x20] sm:$0xf0] %v317_v15  ;;  %v527_v20 = vsel %vm156_vm2, %v521_v19, %v523_v5 }
 0x144   :  { %535 = vst [vmem:[#allocation3 + $0x78] sm:$0xf0] %v527_v20 }
 0x145   :  { %v450_v14 = vpop.permute.xlu1 %449 }
 0x146   :  { %v106_v22 = vpop.permute.xlu0 %105 }
 0x149   :  { %v110_v25 = vpop.permute.xlu1 %109 }
 0x14a   :  { %v240_v10 = vpop.permute.xlu0 %239 }
 0x14d   :  { %v177_v21 = vpop.permute.xlu1 %176 }
 0x14e   :  { %v184_v26 = vsel %vm182_vm5, %v175_v56, %v177_v21  ;;  %v185_v27 = vsel %vm182_vm5, %v177_v21, %v179_v2  ;;  %v385_v28 = vpop.permute.xlu0 %384 }
 0x14f   :  { %192 = vst [vmem:[#allocation3 + $0x8] sm:$0xf0] %v184_v26  ;;  %193 = vst [vmem:[#allocation3 + $0x10] sm:$0xf0] %v185_v27  ;;  %v394_v16 = vsel %vm290_vm3, %v385_v28, %v387_v61  ;;  %v613_v26 = vld [vmem:[#allocation3 + $0x58] sm:$0xff] }
 0x150   :  { %402 = vst [vmem:[#allocation3 + $0x40] sm:$0xf0] %v394_v16 }
 0x151   :  { %v244_v24 = vpop.permute.xlu1 %243 }
 0x152   :  { %v515_v30 = vpop.permute.xlu0 %514 }
 0x153   :  { %v524_v4 = vsel %vm156_vm2, %v515_v30, %v1376_v63 }
 0x154   :  { %532 = vst [vmem:[#allocation3 + $0x60] sm:$0xf0] %v524_v4 }
 0x155   :  { %v311_v29 = vpop.permute.xlu1 %310 }
 0x156   :  { %v318_v31 = vsel %vm316_vm4, %v309_v59, %v311_v29  ;;  %v319_v32 = vsel %vm316_vm4, %v311_v29, %v313_v6  ;;  %v108_v33 = vpop.permute.xlu0 %107 }
 0x157   :  { %326 = vst [vmem:[#allocation3 + $0x28] sm:$0xf0] %v318_v31  ;;  %327 = vst [vmem:[#allocation3 + $0x30] sm:$0xf0] %v319_v32  ;;  %v116_v34 = vsel %vm115_vm10, %v106_v22, %v108_v33  ;;  %v117_v23 = vsel %vm115_vm10, %v108_v33, %v110_v25  ;;  %v610_v11 = vld [vmem:[#allocation3 + $0x40] sm:$0xff] }
 0x158   :  { %124 = vst [vmem:[#allocation3] sm:$0xf] %v116_v34  ;;  %125 = vst [vmem:[#allocation3 + $0x8] sm:$0xf] %v117_v23  ;;  %v601_v31 = vld [vmem:[%s1452_s2] sm:$0xf] }
 0x159   :  { %v389_v35 = vpop.permute.xlu1 %388 }
 0x15a   :  { %v395_v36 = vsel %vm290_vm3, %v387_v61, %v389_v35  ;;  %v396_v37 = vsel %vm290_vm3, %v389_v35, %v391_v12  ;;  %v242_v38 = vpop.permute.xlu0 %241 }
 0x15b   :  { %403 = vst [vmem:[#allocation3 + $0x48] sm:$0xf0] %v395_v36  ;;  %404 = vst [vmem:[#allocation3 + $0x50] sm:$0xf0] %v396_v37  ;;  %v250_v40 = vsel %vm249_vm7, %v240_v10, %v242_v38  ;;  %v251_v41 = vsel %vm249_vm7, %v242_v38, %v244_v24  ;;  %v784_v38 = vld [vmem:[%s1453_s3] sm:$0xf] }
 0x15c   :  { %258 = vst [vmem:[#allocation3 + $0x20] sm:$0xf] %v250_v40  ;;  %259 = vst [vmem:[#allocation3 + $0x28] sm:$0xf] %v251_v41  ;;  %s1103_s3 = smov [#allocation9]  }
 0x15d   :  { %v454_v42 = vpop.permute.xlu1 %453  ;;  %s963_s24 = sshll.u32 %s1103_s3, 4  ;;  %s964_s24 = int_to_ptr.vmem [resolvable:$true] %s963_s24 }
 0x15e   :  { %v452_v43 = vpop.permute.xlu0 %451  ;;  %s1062_s25 = scalar_lea.vmem %s964_s24, 256  ;;  %p1067_p3 = scmp.lt.s32.totalorder %s964_s24, %s964_s24 }
 0x15f   :  { %v459_v44 = vsel %vm224_vm9, %v450_v14, %v452_v43  ;;  %v460_v45 = vsel %vm224_vm9, %v452_v43, %v454_v42  ;;  %v603_v49 = vld [vmem:[#allocation3 + $0x8] sm:$0xff]  ;;  %v602_v53 = vld [vmem:[#allocation3] sm:$0xff]  ;;  %p1063_p2 = scmp.ne.s32.totalorder %s964_s24, %s1062_s25  ;;  %p1068_p4 = scmp.lt.s32.totalorder %s1062_s25, %s1062_s25 }
 0x160   :  { %467 = vst [vmem:[#allocation3 + $0x60] sm:$0xf] %v459_v44  ;;  %468 = vst [vmem:[#allocation3 + $0x68] sm:$0xf] %v460_v45 }
 0x161   :  { %v519_v46 = vpop.permute.xlu1 %518  ;;  %p1069_p5 = por %p1068_p4, %p1067_p3 }
 0x162   :  { %v525_v39 = vsel %vm156_vm2, %v1376_v63, %v519_v46  ;;  %v526_v47 = vsel %vm156_vm2, %v519_v46, %v521_v19  ;;  %v112_v48 = vpop.permute.xlu0 %111  ;;  %v611_v3 = vld [vmem:[#allocation3 + $0x48] sm:$0xff]  ;;  %v612_v16 = vld [vmem:[#allocation3 + $0x50] sm:$0xff] }
 0x163   :  { %533 = vst [vmem:[#allocation3 + $0x68] sm:$0xf0] %v525_v39  ;;  %534 = vst [vmem:[#allocation3 + $0x70] sm:$0xf0] %v526_v47  ;;  %v118_v50 = vsel %vm115_vm10, %v110_v25, %v112_v48  ;;  %v119_v51 = vsel %vm115_vm10, %v112_v48, %v1372_v55  ;;  %v607_v52 = vld [vmem:[#allocation3 + $0x28] sm:$0xff]  ;;  %v606_v54 = vld [vmem:[#allocation3 + $0x20] sm:$0xff]  ;;  %p1070_p6 = pnand %p1069_p5, %p1063_p2 }
 0x164   :  { %126 = vst [vmem:[#allocation3 + $0x10] sm:$0xf] %v118_v50  ;;  %127 = vst [vmem:[#allocation3 + $0x18] sm:$0xf] %v119_v51  ;;  %v988_v56 = vpack.c.bf16 %v607_v52, %v603_v49  ;;  %v990_v57 = vpack.c.bf16 %v606_v54, %v602_v53 }
 0x165   :  { %v582_v59 = vpop.permute.xlu1 %581 }
 0x166   :  { %989 = vmatprep.subr.bf16.mxu0 %v988_v56  ;;  %v246_v60 = vpop.permute.xlu0 %245 }
 0x167   :  { %v252_v61 = vsel %vm249_vm7, %v244_v24, %v246_v60  ;;  %v253_v62 = vsel %vm249_vm7, %v246_v60, %v1374_v58  ;;  %991 = vmatpush1.bf16.msra.mxu0 %v990_v57  ;;  %v614_v55 = vld [vmem:[#allocation3 + $0x60] sm:$0xff] }
 0x168   :  { %260 = vst [vmem:[#allocation3 + $0x30] sm:$0xf] %v252_v61  ;;  %261 = vst [vmem:[#allocation3 + $0x38] sm:$0xf] %v253_v62  ;;  %v994_v12 = vpack.c.bf16 %v614_v55, %v610_v11 }
 0x169   :  { %v586_v63 = vpop.permute.xlu1 %585 }
 0x16a   :  { %v456_v2 = vpop.permute.xlu0 %455  ;;  %v615_v5 = vld [vmem:[#allocation3 + $0x68] sm:$0xff] }
 0x16b   :  { %v461_v6 = vsel %vm224_vm9, %v454_v42, %v456_v2  ;;  %v462_v7 = vsel %vm224_vm9, %v456_v2, %v1378_v0  ;;  %v992_v9 = vpack.c.bf16 %v615_v5, %v611_v3  ;;  %v605_v15 = vld [vmem:[#allocation3 + $0x18] sm:$0xff]  ;;  %v604_v22 = vld [vmem:[#allocation3 + $0x10] sm:$0xff] }
 0x16c   :  { %469 = vst [vmem:[#allocation3 + $0x70] sm:$0xf] %v461_v6  ;;  %470 = vst [vmem:[#allocation3 + $0x78] sm:$0xf] %v462_v7 }
 0x16d   :  { %v580_v8 = vpop.permute.xlu1 %579  ;;  %993 = vmatprep.subr.bf16.mxu0 %v992_v9 }
 0x16e   :  { %v589_v58 = vsel %vm89_vm8, %v580_v8, %v582_v59  ;;  %995 = vmatpush1.bf16.msra.mxu0 %v994_v12  ;;  %v584_v13 = vpop.permute.xlu0 %583 }
 0x16f   :  { %597 = vst [vmem:[#allocation3 + $0x80] sm:$0xf] %v589_v58  ;;  %v590_v19 = vsel %vm89_vm8, %v582_v59, %v584_v13  ;;  %v591_v20 = vsel %vm89_vm8, %v584_v13, %v586_v63  ;;  %v609_v14 = vld [vmem:[#allocation3 + $0x38] sm:$0xff]  ;;  %v608_v0 = vld [vmem:[#allocation3 + $0x30] sm:$0xff] }
 0x170   :  { %598 = vst [vmem:[#allocation3 + $0x88] sm:$0xf] %v590_v19  ;;  %599 = vst [vmem:[#allocation3 + $0x90] sm:$0xf] %v591_v20  ;;  %v996_v25 = vpack.c.bf16 %v609_v14, %v605_v15  ;;  %v998_v10 = vpack.c.bf16 %v608_v0, %v604_v22 }
 0x172   :  { %997 = vmatprep.subr.bf16.mxu1 %v996_v25  ;;  %v588_v21 = vpop.permute.xlu0 %587 }
 0x173   :  { %v592_v27 = vsel %vm89_vm8, %v586_v63, %v588_v21  ;;  %999 = vmatpush1.bf16.msra.mxu1 %v998_v10  ;;  %v617_v28 = vld [vmem:[#allocation3 + $0x78] sm:$0xff]  ;;  %v616_v24 = vld [vmem:[#allocation3 + $0x70] sm:$0xff] }
 0x174   :  { %600 = vst [vmem:[#allocation3 + $0x98] sm:$0xf] %v592_v27  ;;  %v1000_v30 = vpack.c.bf16 %v617_v28, %v613_v26  ;;  %v1002_v4 = vpack.c.bf16 %v616_v24, %v612_v16 }
 0x176   :  { %1001 = vmatprep.subr.bf16.mxu1 %v1000_v30  ;;  %v618_v32 = vld [vmem:[#allocation3 + $0x80] sm:$0xf] }
 0x177   :  { %1003 = vmatpush1.bf16.msra.mxu1 %v1002_v4  ;;  %v619_v29 = vld [vmem:[#allocation3 + $0x88] sm:$0xf]  ;;  %v620_v34 = vld [vmem:[#allocation3 + $0x90] sm:$0xf] }
 0x178   :  { %976 = vmatprep.subr.msk.mxu0 %vm91_vm6, %v619_v29 }
 0x179   :  { %977 = vmatpush1.msk.msra.mxu0 %vm91_vm6, %v618_v32 }
 0x17a   :  { %978 = vmatmul.mubr.msk.f32.vlgmr.msra.gmra.mrb[0].mxu0 %vm622_vm11, %v601_v31 }
 0x17b   :  { %v621_v33 = vld [vmem:[#allocation3 + $0x98] sm:$0xf]  ;;  %865 = vmatprep.mubr.f32.mxu0 %v1094_v1 }
 0x17c   :  { %979 = vmatprep.subr.msk.mxu1 %vm91_vm6, %v621_v33 }
 0x17d   :  { %980 = vmatpush1.msk.msra.mxu1 %vm91_vm6, %v620_v34 }
 0x17e   :  { %981 = vmatmul.mubr.msk.f32.vlgmr.msra.gmra.mrb[0].mxu1 %vm622_vm11, %v601_v31 }
 0x17f   :  { %936 = vmatprep.mubr.f32.mxu1 %v1094_v1 }
 0x24d   :  { %v704_v23 = vpop.f32.mrb[0].mxu0 }
 0x24e   :  { %v780_v35 = vmax.f32 %v704_v23, 0.0  ;;  %v706_v36 = vpop.f32.mrb[1].mxu0 }
 0x24f   :  { %v781_v37 = vmax.f32 %v706_v36, 0.0 }
 0x251   :  { %v775_v40 = vpop.f32.mrb[0].mxu1  ;;  %982 = vmatprep.subr.msk.mxu0 %vm91_vm6, %v781_v37 }
 0x252   :  { %v777_v41 = vpop.f32.mrb[1].mxu1  ;;  %983 = vmatpush1.msk.msra.mxu0 %vm91_vm6, %v780_v35  ;;  %v782_v43 = vmax.f32 %v775_v40, 0.0 }
 0x253   :  { %v783_v42 = vmax.f32 %v777_v41, 0.0  ;;  %984 = vmatmul.mubr.msk.f32.vlgmr.msra.gmra.mrb[2].mxu0 %vm785_vm12, %v784_v38 }
 0x255   :  { %985 = vmatprep.subr.msk.mxu1 %vm91_vm6, %v783_v42 }
 0x256   :  { %986 = vmatpush1.msk.msra.mxu1 %vm91_vm6, %v782_v43 }
 0x257   :  { %987 = vmatmul.mubr.msk.f32.vlgmr.msra.gmra.mrb[2].mxu1 %vm785_vm12, %v784_v38 }
 0x326   :  { %v867_v1 = vpop.f32.mrb[2].mxu0 }
 0x327   :  { %v869_v44 = vpop.f32.mrb[3].mxu0 }
 0x328   :  { %v946_v45 = vcombine.low %v867_v1, %v869_v44 }
 0x32a   :  { %v938_v46 = vpop.f32.mrb[2].mxu1  ;;  %v948_v39 = vadd.f32 %v946_v45, %v1180_v17 }
 0x32b   :  { %v940_v47 = vpop.f32.mrb[3].mxu1 }
 0x32c   :  { %949 = vst [vmem:[#allocation9] sm:$0xff] %v948_v39  ;;  %v953_v48 = vcombine.low %v938_v46, %v940_v47 }
 0x32e   :  { %v955_v49 = vadd.f32 %v953_v48, %v1182_v18 }
 0x330   :  { %957 = vst [vmem:[#allocation9 + $0x8] sm:$0xff] %v955_v49 }
 0x331   :  { %1073 = shalt.err (!%p1070_p6)
}
 0x332   :  { %s1074_s28 = scalar_lea.hbm %s1454_s4, 256 }
 0x333   :  { %p1075_p7 = scmp.ne.s32.totalorder %s1454_s4, %s1074_s28  ;;  %p1078_p8 = scmp.lt.u32.totalorder %s1074_s28, %s1454_s4 }
 0x335   :  { %p1080_p9 = pnand %p1078_p8, %p1075_p7 }
 0x337   :  { %1083 = shalt.err (!%p1080_p9)
}
 0x338   :  { %969 = dma.vmem_to_hbm [thread:$0]  %s964_s24, 256, %s1454_s4, [#allocation6], %s1092_s0, %s1092_s0, %s1093_s11  }
 0x339   :  { %1088 = dma.done.wait [#allocation6], 256  }
 0x33a   :  { %1089 = vsyncadd [#allocation6], 4294967040 }
 0x33b   :  { %973 = vsyncpa [#allocation5], 1 }
 0x33c   :  { %974 = vsyncpa [#allocation8], 1 }
 0x33d   :  { %975 = vsyncpa [#allocation6], 1 }

</bundles_post_ra>
